<compile_context>
chip_gen: v7x
topology: tpu7x:2x2x1
jax: 0.10.0
libtpu: 0.0.40
codegen_flags: <defaults>
</compile_context>

<pallas_src>
import functools
import math

import jax
import jax.numpy as jnp
from jax.experimental import pallas as pl
from jax.experimental.pallas import tpu as pltpu


def _vmem_capacity_bytes():
    try:
        return int(pltpu.get_tpu_info().vmem_capacity_bytes)
    except Exception:
        return 64 * 1024 * 1024  # conservative fallback (v7x physical VMEM)


def _pick_tk(tn, d, itemsize):
    """Pick a D-tile (multiple of 128): ~8 MiB per-input blocks sized from VMEM."""
    d_ceil = ((d + 127) // 128) * 128
    vmem_cap = _vmem_capacity_bytes()
    # 2 inputs x 2 double-buffers = 4 blocks resident -> cap a single block at
    # 1/8 of physical VMEM (and at 8 MiB absolute) so the pipeline uses <= 1/2.
    block_cap_bytes = min(8 * 1024 * 1024, vmem_cap // 8)
    tk_cap = block_cap_bytes // (tn * itemsize)
    tk_cap = max(128, (tk_cap // 128) * 128)
    if tk_cap >= d_ceil:
        return d_ceil
    # Balance the K tiles so the last one has minimal overhang.
    num_k = pl.cdiv(d_ceil, tk_cap)
    return ((pl.cdiv(d, num_k) + 127) // 128) * 128


def _choose_split(n, d_total, tn_target):
    """Split each sample into g sub-rows (metadata-only reshape) so rows fills
    all 8 sublanes and (ideally) gives >= 2 row-blocks for v7x megacore."""

    def score(g):
        rows = n * g
        s = 0.0
        if rows % 8 == 0:
            s += 2.0                      # full sublane utilization
        if rows >= 2 * tn_target:
            s += 1.0                      # >= 2 row-blocks (megacore sharding)
        return s - 0.01 * g               # prefer smaller g on ties

    best_g, best_s = 1, score(1)
    for g in (2, 4, 8, 16, 32):
        if d_total % g != 0 or (d_total // g) < 128:
            continue
        s = score(g)
        if s > best_s:
            best_g, best_s = g, s
    return best_g


def _sse_kernel(x_ref, y_ref, out_ref, *, d, tk, mask_tail, unroll):
    """Accumulate per-row sum-of-squared-differences into a lane-dense (tn, 128)
    output block; the output block is the accumulator across the k grid axis."""
    k = pl.program_id(1)

    @pl.when(k == 0)
    def _():
        out_ref[...] = jnp.zeros_like(out_ref)

    num_chunks = tk // 128

    def body(c, acc):
        off = pl.multiple_of(c * 128, 128)
        # Cast to f32 *inside* the kernel, per 128-lane chunk: HBM traffic stays
        # at native width and only a few vregs of f32 temps are live at once.
        xb = x_ref[:, pl.ds(off, 128)].astype(jnp.float32)
        yb = y_ref[:, pl.ds(off, 128)].astype(jnp.float32)
        diff = xb - yb
        sq = diff * diff
        if mask_tail:
            lane = jax.lax.broadcasted_iota(jnp.int32, sq.shape, dimension=1)
            sq = jnp.where(k * tk + off + lane < d, sq, 0.0)
        return acc + sq

    acc = jax.lax.fori_loop(
        0, num_chunks, body,
        jnp.zeros(out_ref.shape, jnp.float32),
        unroll=max(1, min(unroll, num_chunks)),
    )
    out_ref[...] += acc


def psnr_pallas(x, y, *, epsilon=1e-8, value_range=1.0, reduction="mean", tk=None):
    """PSNR matching piqa's PSNR module. x, y: (N, *) arrays of identical shape."""
    assert x.shape == y.shape
    n = x.shape[0]
    d_total = int(math.prod(x.shape[1:])) if x.ndim > 1 else 1

    itemsize = jnp.dtype(x.dtype).itemsize
    tn_target = max(8, 32 // max(1, itemsize))  # 8 f32 / 16 bf16 / 32 int8

    g = _choose_split(n, d_total, tn_target)
    rows = n * g
    d = d_total // g

    xf = jnp.reshape(x, (rows, d))
    yf = jnp.reshape(y, (rows, d))

    tn = rows if rows < tn_target else tn_target
    if tk is None:
        tk = _pick_tk(tn, d, itemsize)
    else:
        tk = max(128, (int(tk) // 128) * 128)

    num_n = pl.cdiv(rows, tn)
    num_k = pl.cdiv(d, tk)
    mask_tail = (d % tk) != 0

    kernel = functools.partial(_sse_kernel, d=d, tk=tk, mask_tail=mask_tail, unroll=8)

    cost = pl.CostEstimate(
        flops=3 * rows * d,
        transcendentals=0,
        bytes_accessed=2 * rows * d * itemsize + rows * 128 * 4,
    )

    # vmem_limit from the actual footprint: 2 inputs x 2 buffers + 2 output
    # buffers + slack, clamped below physical VMEM.
    block_bytes = tn * tk * itemsize
    footprint = 4 * block_bytes + 2 * tn * 128 * 4
    vmem_cap = _vmem_capacity_bytes()
    vmem_limit = int(max(16 * 1024 * 1024,
                         min(vmem_cap - 8 * 1024 * 1024,
                             footprint + 8 * 1024 * 1024)))

    sse_lanes = pl.pallas_call(
        kernel,
        out_shape=jax.ShapeDtypeStruct((rows, 128), jnp.float32),
        grid_spec=pltpu.PrefetchScalarGridSpec(
            num_scalar_prefetch=0,
            grid=(num_n, num_k),                    # reduction axis last
            in_specs=[
                pl.BlockSpec((tn, tk), lambda i, k: (i, k)),
                pl.BlockSpec((tn, tk), lambda i, k: (i, k)),
            ],
            # Lane-dense output; same block across k -> it is the accumulator.
            # A partial last row-block reads unspecified padding rows, but their
            # outputs live outside the (rows, 128) array and are never written
            # back / used (per-row results only -> no cross-row pollution).
            out_specs=pl.BlockSpec((tn, 128), lambda i, k: (i, 0)),
        ),
        compiler_params=pltpu.CompilerParams(
            dimension_semantics=("parallel", "arbitrary"),
            vmem_limit_bytes=vmem_limit,
        ),
        cost_estimate=cost,
    )(xf, yf)

    # Tiny epilogue in plain JAX: lane sum, per-sample re-sum, mse -> PSNR.
    sse_per_row = jnp.sum(sse_lanes, axis=-1)                       # (rows,)
    sse_per_sample = jnp.sum(jnp.reshape(sse_per_row, (n, g)), axis=-1)  # (N,)
    mse = sse_per_sample / jnp.float32(d_total)
    l = 10.0 * jnp.log10(jnp.float32(value_range) ** 2 / (mse + jnp.float32(epsilon)))

    # TODO(synk): the module's assert_type input-range validation is host-side
    # and intentionally not reproduced in the kernel.
    if reduction == "mean":
        return jnp.mean(l)
    if reduction == "sum":
        return jnp.sum(l)
    return l  # 'none'


def _psnr_ref(x, y, epsilon=1e-8, value_range=1.0):
    n = x.shape[0]
    mse_ref = jnp.mean((x.reshape(n, -1).astype(jnp.float32)
                        - y.reshape(n, -1).astype(jnp.float32)) ** 2, axis=-1)
    return 10.0 * jnp.log10(value_range ** 2 / (mse_ref + epsilon))


if __name__ == "__main__":
    key = jax.random.PRNGKey(0)
    kx, ky, ka, kb = jax.random.split(key, 4)

    # Small shapes consistent with the module's (N, C, H, W) usage.
    x = jax.random.uniform(kx, (2, 4, 16, 16), dtype=jnp.float32)
    y = jax.random.uniform(ky, (2, 4, 16, 16), dtype=jnp.float32)

    out_none = jax.block_until_ready(psnr_pallas(x, y, reduction="none"))
    out_mean = jax.block_until_ready(psnr_pallas(x, y, reduction="mean"))

    ref_none = _psnr_ref(x, y)
    ref_mean = jnp.mean(ref_none)
    assert jnp.allclose(out_none, ref_none, rtol=1e-5, atol=1e-5), (out_none, ref_none)
    assert jnp.allclose(out_mean, ref_mean, rtol=1e-5, atol=1e-5), (out_mean, ref_mean)

    # Odd batch / non-multiple-of-128 D exercises the ragged-tail mask and
    # partial row blocks.
    a = jax.random.uniform(ka, (3, 3, 17, 17), dtype=jnp.float32)
    b = jax.random.uniform(kb, (3, 3, 17, 17), dtype=jnp.float32)
    out2 = jax.block_until_ready(psnr_pallas(a, b, reduction="none"))
    ref2 = _psnr_ref(a, b)
    assert jnp.allclose(out2, ref2, rtol=1e-5, atol=1e-5), (out2, ref2)

    print("KERNEL_OK")
</pallas_src>

<mosaic_0001>
module attributes {stable_mosaic.version = 11 : i64} {
  func.func @_sse_kernel(%arg0: i32, %arg1: i32, %arg2: memref<8x128xf32, #tpu.memory_space<vmem>>, %arg3: memref<8x128xf32, #tpu.memory_space<vmem>>, %arg4: memref<8x128xf32, #tpu.memory_space<vmem>>) attributes {dimension_semantics = [#tpu.dimension_semantics<parallel>, #tpu.dimension_semantics<arbitrary>], iteration_bounds = array<i64: 2, 1>, scalar_prefetch = 0 : i64, scratch_operands = 0 : i64, tpu.core_type = #tpu.core_type<tc>, window_params = [{transform_indices = @transform_0, window_bounds = array<i64: 8, 128>}, {transform_indices = @transform_1, window_bounds = array<i64: 8, 128>}, {transform_indices = @transform_2, window_bounds = array<i64: 8, 128>}]} {
    %c0_i32 = arith.constant 0 : i32
    %0 = arith.cmpi eq, %arg1, %c0_i32 : i32
    %1 = arith.extui %0 : i1 to i32
    %c0_i32_0 = arith.constant 0 : i32
    %2 = arith.cmpi ne, %1, %c0_i32_0 : i32
    scf.if %2 {
      %cst_7 = arith.constant 0.000000e+00 : f32
      %16 = vector.broadcast %cst_7 : f32 to vector<8x128xf32>
      %c0_8 = arith.constant 0 : index
      %c0_9 = arith.constant 0 : index
      %17 = vector.load %arg4[%c0_8, %c0_9] : memref<8x128xf32, #tpu.memory_space<vmem>>, vector<8x128xf32>
      tpu.vector_store %arg4[%c0_8, %c0_9], %16 {strides = array<i32>} : memref<8x128xf32, #tpu.memory_space<vmem>>, vector<8x128xf32>,
    } else {
    }
    %cst = arith.constant 0.000000e+00 : f32
    %3 = vector.broadcast %cst : f32 to vector<8x128xf32>
    %c0_i32_1 = arith.constant 0 : i32
    %c128_i32 = arith.constant 128 : i32
    %4 = arith.muli %c0_i32_1, %c128_i32 : i32
    %5 = tpu.assume_multiple %4, 128 : i32
    %c0 = arith.constant 0 : index
    %6 = arith.index_cast %5 : i32 to index
    %7 = vector.load %arg2[%c0, %6] : memref<8x128xf32, #tpu.memory_space<vmem>>, vector<8x128xf32>
    %c0_2 = arith.constant 0 : index
    %8 = arith.index_cast %5 : i32 to index
    %9 = vector.load %arg3[%c0_2, %8] : memref<8x128xf32, #tpu.memory_space<vmem>>, vector<8x128xf32>
    %10 = arith.subf %7, %9 : vector<8x128xf32>
    %11 = arith.mulf %10, %10 : vector<8x128xf32>
    %12 = arith.addf %3, %11 : vector<8x128xf32>
    %c1_i32 = arith.constant 1 : i32
    %c0_3 = arith.constant 0 : index
    %c0_4 = arith.constant 0 : index
    %13 = vector.load %arg4[%c0_3, %c0_4] : memref<8x128xf32, #tpu.memory_space<vmem>>, vector<8x128xf32>
    %14 = arith.addf %13, %12 : vector<8x128xf32>
    %c0_5 = arith.constant 0 : index
    %c0_6 = arith.constant 0 : index
    %15 = vector.load %arg4[%c0_5, %c0_6] : memref<8x128xf32, #tpu.memory_space<vmem>>, vector<8x128xf32>
    tpu.vector_store %arg4[%c0_5, %c0_6], %14 {strides = array<i32>} : memref<8x128xf32, #tpu.memory_space<vmem>>, vector<8x128xf32>,
    return
  }
  func.func @transform_0(%arg0: i32, %arg1: i32) -> (i32, i32) {
    %c0_i32 = arith.constant 0 : i32
    return %arg0, %arg1 : i32, i32
  }
  func.func @transform_1(%arg0: i32, %arg1: i32) -> (i32, i32) {
    %c0_i32 = arith.constant 0 : i32
    return %arg0, %arg1 : i32, i32
  }
  func.func @transform_2(%arg0: i32, %arg1: i32) -> (i32, i32) {
    %c0_i32 = arith.constant 0 : i32
    %c0_i32_0 = arith.constant 0 : i32
    return %arg0, %c0_i32 : i32, i32
  }
}

</mosaic_0001>

<bundles_post_ra>
// kernel: tpu_custom_call.1
= control target key start
LH: loop header
LB: loop body
LE: loop exit
PB: predicated region body
PF: predicated region fallthrough
CT: control target
= control target key end

     0   :  { %7 = vsyncpa [#allocation3], 0  ;;  %s814_s0 = inlined_call_operand.hbm [shape: f32[16,128], index: 0, kind: input, shape index: {}]   ;;  %s815_s1 = inlined_call_operand.hbm [shape: f32[16,128], index: 1, kind: input, shape index: {}]   ;;  %s816_s2 = inlined_call_operand.hbm [shape: f32[16,128], index: 2, kind: output, shape index: {}]  }
   0x1   :  { %9 = vsyncpa [#allocation3 + $0x1], 0 }
   0x2   :  { %10 = vsyncpa [#allocation6], 0 }
   0x3   :  { %12 = vsyncpa [#allocation6 + $0x1], 0 }
   0x4   :  { %13 = vsyncpa [#allocation4], 0 }
   0x5   :  { %15 = vsyncpa [#allocation4 + $0x1], 0  ;;  %s594_s9 = smov 0   ;;  %s596_s10 = smov 0  }
   0x6   :  { %s598_s11 = smov 0   ;;  %s600_s12 = smov 0  }
   0x7   :  { %s602_s13 = smov 0   ;;  %s604_s14 = smov 0  }
   0x8 LB: > { %s344_s15 = sadd.s32 4294967295, %s574_s14   ;;  %s345_s16 = sadd.s32 4294967294, %s574_s14   ;;  %s574_s14 = sphi %s604_s14, %s21_s14   ;;  %s570_s13 = sphi %s602_s13, %s836_s13   ;;  %s566_s12 = sphi %s600_s12, %s835_s12   ;;  %s562_s11 = sphi %s598_s11, %s834_s11   ;;  %s558_s10 = sphi %s596_s10, %s833_s10   ;;  %s554_s9 = sphi %s594_s9, %s832_s9  }
   0x9   : > { %s33_s17 = sadd.s32 1, %s570_s13  ;;  %s42_s18 = sadd.s32 1, %s562_s11 }
   0xa   : > { %p35_p0 = scmp.ge.s32.totalorder %s33_s17, 2  ;;  %p49_p1 = scmp.ne.s32.totalorder %s562_s11, %s558_s10 }
   0xb   : > { %p50_p2 = scmp.eq.s32.totalorder %s574_s14, 0  ;;  %p55_p3 = scmp.ne.s32.totalorder %s558_s10, %s554_s9 }
   0xc   : > { %s838_s17 = smov (%p35_p0, %s33_s17), 0  ;;  %p56_p5 = scmp.eq.s32.totalorder %s344_s15, 0 }
   0xd   : > { %p635_p4 = por %p50_p2, %p49_p1  ;;  %s37_s20 = ssub.s32 %s570_s13, %s838_s17 }
   0xe   : > { %p107_p6 = scmp.eq.s32.totalorder %s344_s15, 1  ;;  %p40_p7 = scmp.eq.s32.totalorder %s37_s20, 0 }
   0xf   : > { %p641_p8 = por %p56_p5, %p55_p3  ;;  %p113_p10 = scmp.eq.s32.totalorder %s345_s16, 1 }
  0x10   : > { %p645_p9 = por %p107_p6, %p49_p1  ;;  %p377_p13 = scmp.lt.s32.totalorder %s574_s14, 2 }
  0x11   : > { %s820_s21 = scalar_select %p641_p8, 1, 0 }
  0x12   : > { %s821_s22 = scalar_select %p645_p9, 1, 0 }
  0x13   : > { %s650_s23 = scalar_select %p40_p7, %s562_s11, %s42_s18  }
  0x14   : > { %p652_p11 = por %p113_p10, %p55_p3  ;;  %s659_s25 = sand.u32 1, %s562_s11  }
  0x15   : > { %s348_s26 = sshll.u32 %s659_s25, 3  ;;  %s349_s27 = sshll.u32 %s570_s13, 7 }
  0x16   : > { %s822_s24 = scalar_select %p652_p11, 1, 0 }
  0x17   : > { %s668_s30 = scalar_lea.hbm %s814_s0, %s349_s27  ;;  %s137_s3 = scalar_lea.vmem [#allocation2], %s348_s26 }
  0x18   : > { %s145_s4 = sshll.u32 %s137_s3, 4  ;;  %p676_p0 = pnand %p377_p13, %p635_p4  ;;  %s672_s4 = int_to_ptr.vmem [resolvable:$true] %s145_s4 }
  0x19   : > { %s134_s6 = scalar_lea.sflag [#allocation3], %s659_s25  ;;  %s428_s7 = scalar_lea.hbm %s668_s30, 128 }
  0x1a   : > { %p429_p3 = scmp.ne.s32.totalorder %s668_s30, %s428_s7  ;;  %p430_p5 = pneg %p676_p0 }
  0x1b   : > { %s433_s16 = scalar_lea.hbm %s814_s0, 256  ;;  %p434_p4 = scmp.lt.u32.totalorder %s668_s30, %s814_s0 }
  0x1c   : > { %p431_p6 = pnand %p430_p5, %p429_p3  ;;  %p435_p10 = scmp.lt.u32.totalorder %s433_s16, %s428_s7 }
  0x1d   : > { %p437_p12 = scmp.lt.u32.totalorder %s428_s7, %s668_s30 }
  0x1e   : > { %p432_p7 = pneg %p431_p6  ;;  %p436_p13 = por %p435_p10, %p434_p4 }
  0x20   : > { %p438_p1 = por %p437_p12, %p436_p13 }
  0x22   : > { %p439_p2 = pnand %p438_p1, %p432_p7 }
  0x24   : > { %442 = shalt.err (!%p439_p2)
}
  0x25   : > { %s443_s20 = scalar_lea.vmem %s672_s4, 128  ;;  %s576_s28 = smov [#allocation2]  }
  0x26   : > { %p444_p3 = scmp.ne.s32.totalorder %s672_s4, %s443_s20  ;;  %s448_s29 = sshll.u32 %s576_s28, 4  ;;  %s449_s29 = int_to_ptr.vmem [resolvable:$false] %s448_s29 }
  0x27   : > { %s450_s3 = scalar_lea.vmem %s449_s29, 256  ;;  %p451_p9 = scmp.lt.s32.totalorder %s672_s4, %s449_s29 }
  0x28   : > { %p446_p6 = pnand %p444_p3, %p430_p5  ;;  %p452_p4 = scmp.lt.s32.totalorder %s450_s3, %s443_s20 }
  0x2a   : > { %p447_p11 = pneg %p446_p6  ;;  %p453_p10 = por %p452_p4, %p451_p9 }
  0x2c   : > { %p454_p12 = pnand %p453_p10, %p447_p11 }
  0x2e   : > { %457 = shalt.err (!%p454_p12)
}
  0x2f   : > { %369 = dma.hbm_to_vmem [thread:$0]  (!%p676_p0), %s668_s30, 128, %s672_s4, %s134_s6  }
  0x30   : > { %p824_p1 = scmp.lt.s32.totalorder %s574_s14, 3  ;;  %p825_p2 = scmp.ge.s32.totalorder %s574_s14, 1 }
  0x31   : > { %s721_s16 = scalar_lea.hbm %s815_s1, %s349_s27  ;;  %s156_s18 = scalar_lea.vmem [#allocation5], %s348_s26 }
  0x32   : > { %p712_p7 = pnand %p825_p2, %p824_p1  ;;  %s164_s19 = sshll.u32 %s156_s18, 4  ;;  %s165_s19 = int_to_ptr.vmem [resolvable:$true] %s164_s19 }
  0x33   : > { %s153_s30 = scalar_lea.sflag [#allocation6], %s659_s25  ;;  %s458_s4 = scalar_lea.hbm %s721_s16, 128 }
  0x34   : > { %s826_s7 = scalar_select %p712_p7, 1, 0 }
  0x35   : > { %p459_p9 = scmp.ne.s32.totalorder %s721_s16, %s458_s4  ;;  %s463_s27 = scalar_lea.hbm %s815_s1, 256 }
  0x36   : > { %p464_p3 = scmp.lt.u32.totalorder %s721_s16, %s815_s1  ;;  %p465_p6 = scmp.lt.u32.totalorder %s463_s27, %s458_s4 }
  0x37   : > { %p461_p11 = pnand %p459_p9, %p430_p5  ;;  %p467_p10 = scmp.lt.u32.totalorder %s458_s4, %s721_s16 }
  0x38   : > { %p466_p4 = por %p465_p6, %p464_p3 }
  0x39   : > { %p462_p13 = pneg %p461_p11 }
  0x3a   : > { %p468_p12 = por %p467_p10, %p466_p4 }
  0x3c   : > { %p469_p1 = pnand %p468_p12, %p462_p13 }
  0x3e   : > { %472 = shalt.err (!%p469_p1)
}
  0x3f   : > { %s473_s25 = scalar_lea.vmem %s165_s19, 128  ;;  %s577_s26 = smov [#allocation5]  }
  0x40   : > { %p474_p2 = scmp.ne.s32.totalorder %s165_s19, %s473_s25  ;;  %s478_s3 = sshll.u32 %s577_s26, 4  ;;  %s479_s3 = int_to_ptr.vmem [resolvable:$false] %s478_s3 }
  0x41   : > { %s480_s8 = scalar_lea.vmem %s479_s3, 256  ;;  %p481_p8 = scmp.lt.s32.totalorder %s165_s19, %s479_s3 }
  0x42   : > { %p476_p9 = pnand %p474_p2, %p430_p5  ;;  %p482_p7 = scmp.lt.s32.totalorder %s480_s8, %s473_s25 }
  0x44   : > { %p477_p11 = pneg %p476_p9  ;;  %p483_p3 = por %p482_p7, %p481_p8 }
  0x46   : > { %p484_p6 = pnand %p483_p3, %p477_p11 }
  0x48   : > { %487 = shalt.err (!%p484_p6)
}
  0x49   : > { %372 = dma.hbm_to_vmem [thread:$0]  (!%p676_p0), %s721_s16, 128, %s165_s19, %s153_s30  }
  0x4a   : > { %p827_p13 = scmp.ne.s32.totalorder %s826_s7, 0 }
  0x4b   : > { %s748_s15 = sand.u32 (!%p827_p13), 1, %s558_s10   ;;  %p828_p5 = scmp.ne.s32.totalorder (!%p827_p13), %s820_s21, 0 }
  0x4c   : > { %173 = sbr.rel (%p827_p13) target bundleno = 112 (0x70), region = 28  ;;  %s353_s18 = sshll.u32 (!%p827_p13), %s748_s15, 3 }
  0x4d   : > { %s176_s4 = scalar_lea.sflag (!%p827_p13), [#allocation3], %s748_s15  ;;  %s179_s6 = scalar_lea.vmem (!%p827_p13), [#allocation2], %s353_s18 }
  0x53   : > { %541 = dma.done.wait (%p828_p5), %s176_s4, 128  }
  0x54   : > { %543 = vsyncadd (%p828_p5), %s176_s4, 4294967168  ;;  %s185_s5 = scalar_lea.sflag [#allocation6], %s748_s15  ;;  %s188_s16 = scalar_lea.vmem [#allocation5], %s353_s18 }
  0x55   : > { %545 = dma.done.wait (%p828_p5), %s185_s5, 128  }
  0x56   : > { %547 = vsyncadd (%p828_p5), %s185_s5, 4294967168  ;;  %v219_v0 = vld [vmem:[%s179_s6] sm:$0xff]  ;;  %v220_v1 = vld [vmem:[%s188_s16] sm:$0xff]  ;;  %s357_s7 = sshll.u32 %s566_s12, 7  ;;  %s213_s19 = scalar_lea.vmem [#allocation7], %s353_s18 }
  0x57   : > { %v221_v2 = vsub.f32 %v219_v0, %v220_v1  ;;  %s241_s30 = sshll.u32 %s213_s19, 4  ;;  %s765_s28 = scalar_lea.hbm %s816_s2, %s357_s7  ;;  %s767_s30 = int_to_ptr.vmem [resolvable:$true] %s241_s30 }
  0x58   : > { %s228_s21 = scalar_lea.sflag [#allocation4], %s748_s15  ;;  %s488_s29 = scalar_lea.vmem %s767_s30, 128 }
  0x59   : > { %v222_v3 = vmul.f32 %v221_v2, %v221_v2  ;;  %p489_p8 = scmp.ne.s32.totalorder %s767_s30, %s488_s29  ;;  %p829_p0 = scmp.ne.s32.totalorder %s821_s22, 0 }
  0x5a   : > { %s578_s12 = smov [#allocation7]  }
  0x5b   : > { %226 = vst [vmem:[%s213_s19] sm:$0xff] %v222_v3  ;;  %p490_p7 = pnand %p489_p8, %p829_p0  ;;  %s492_s25 = sshll.u32 %s578_s12, 4  ;;  %s493_s25 = int_to_ptr.vmem [resolvable:$false] %s492_s25 }
  0x5c   : > { %s494_s26 = scalar_lea.vmem %s493_s25, 256  ;;  %p495_p10 = scmp.lt.s32.totalorder %s767_s30, %s493_s25 }
  0x5d   : > { %p491_p4 = pneg %p490_p7  ;;  %p496_p12 = scmp.lt.s32.totalorder %s494_s26, %s488_s29 }
  0x5f   : > { %p497_p1 = por %p496_p12, %p495_p10 }
  0x61   : > { %p498_p2 = pnand %p497_p1, %p491_p4 }
  0x63   : > { %501 = shalt.err (!%p498_p2)
}
  0x64   : > { %s502_s3 = scalar_lea.hbm %s765_s28, 128  ;;  %s506_s18 = scalar_lea.hbm %s816_s2, 256 }
  0x65   : > { %p503_p9 = scmp.ne.s32.totalorder %s765_s28, %s502_s3  ;;  %p507_p6 = scmp.lt.u32.totalorder %s765_s28, %s816_s2 }
  0x66   : > { %p508_p13 = scmp.lt.u32.totalorder %s506_s18, %s502_s3  ;;  %p510_p8 = scmp.lt.u32.totalorder %s502_s3, %s765_s28 }
  0x67   : > { %p504_p11 = pnand %p503_p9, %p829_p0 }
  0x68   : > { %p509_p5 = por %p508_p13, %p507_p6 }
  0x69   : > { %p505_p3 = pneg %p504_p11 }
  0x6a   : > { %p511_p7 = por %p510_p8, %p509_p5 }
  0x6c   : > { %p512_p4 = pnand %p511_p7, %p505_p3 }
  0x6e   : > { %515 = shalt.err (!%p512_p4)
}
  0x6f   : > { %364 = dma.vmem_to_hbm [thread:$0]  (%p829_p0), %s767_s30, 128, %s765_s28, %s228_s21  }
  0x70 PF: > { %s253_s5 = sand.u32 1, %s554_s9   ;;  %p830_p10 = scmp.ne.s32.totalorder %s822_s24, 0 }
  0x71   : > { %p831_p12 = scmp.ge.s32.totalorder %s574_s14, 2  ;;  %s254_s16 = scalar_lea.sflag [#allocation4], %s253_s5 }
  0x73   : > { %p374_p1 = pnand %p831_p12, %p830_p10 }
  0x75   : > { %549 = dma.done.wait (!%p374_p1), %s254_s16, 128  }
  0x76   : > { %551 = vsyncadd (!%p374_p1), %s254_s16, 4294967168  ;;  %s21_s14 = sadd.s32 1, %s574_s14   ;;  %s832_s9 = smov %s558_s10 }
  0x77   : > { %p18_p2 = scmp.ge.s32.totalorder %s21_s14, 4   ;;  %s833_s10 = smov %s562_s11 }
  0x78   : > { %s834_s11 = smov %s650_s23  ;;  %s835_s12 = smov %s570_s13 }
  0x79   : > { %s836_s13 = smov %s838_s17  ;;  %20 = sbr.rel (!%p18_p2) target bundleno = 8 (0x8), region = 90 }
  0x80   :  { %259 = vsyncpa [#allocation3], 1 }
  0x81   :  { %261 = vsyncpa [#allocation3 + $0x1], 1 }
  0x82   :  { %262 = vsyncpa [#allocation6], 1 }
  0x83   :  { %264 = vsyncpa [#allocation6 + $0x1], 1 }
  0x84   :  { %265 = vsyncpa [#allocation4], 1 }
  0x85   :  { %267 = vsyncpa [#allocation4 + $0x1], 1 }

</bundles_post_ra>
